<compile_context>
chip_gen: v6e
topology: v6e:2x2x1
jax: 0.10.0
libtpu: 0.0.40
codegen_flags: <defaults>
</compile_context>

<pallas_src>
import functools

import jax
import jax.numpy as jnp
from jax import lax
from jax.experimental import pallas as pl
from jax.experimental.pallas import tpu as pltpu


def _ce_kernel(n_rows, n_classes, tile_n, tile_c,
               target_ref, logits_ref, out_ref, mlp_ref):
    """Online-logsumexp cross entropy.

    target_ref: (tile_n, 1) int32 class indices
    logits_ref: (tile_n, tile_c) logits (any float dtype; upcast to f32 in the exp path)
    out_ref:    (1, 8, 128) f32 per-N-tile partial loss sum (broadcast-filled, lane dense)
    mlp_ref:    (tile_n, 3) f32 packed scratch: [:,0]=running max, [:,1]=running sumexp,
                [:,2]=picked target logit
    """
    i = pl.program_id(0)            # N-tile index ("parallel")
    j = pl.program_id(1)            # C-tile index ("arbitrary" reduction, trailing)
    last_j = pl.num_programs(1) - 1

    @pl.when(j == 0)
    def _init():
        lane = lax.broadcasted_iota(jnp.int32, (tile_n, 3), 1)
        # lane 0: m = -inf ; lane 1: l = 0 ; lane 2: picked = 0
        mlp_ref[...] = jnp.where(lane == 0, -jnp.inf, 0.0).astype(jnp.float32)

    raw = logits_ref[...]                                       # (tile_n, tile_c), input dtype
    tgt = target_ref[...]                                       # (tile_n, 1) int32
    local_col = lax.broadcasted_iota(jnp.int32, (tile_n, tile_c), 1)

    # Ragged last C tile: mask out-of-range columns to -inf, but ONLY on the final C step,
    # so the steady-state loop pays no per-element masking cost.
    if (n_classes % tile_c) != 0:
        rem = n_classes - j * tile_c                            # scalar valid width of this tile
        neg_inf = jnp.asarray(-jnp.inf, dtype=raw.dtype)
        raw = lax.cond(j == last_j,
                       lambda x: jnp.where(local_col < rem, x, neg_inf),
                       lambda x: x,
                       raw)

    mlp = mlp_ref[...]                                          # (tile_n, 3) f32
    m_old = mlp[:, 0:1]
    l_old = mlp[:, 1:2]
    p_old = mlp[:, 2:3]

    # Row max in the input dtype (cheap VPU pass); f32 cast deferred to the exp/gather path.
    tile_max = jnp.max(raw, axis=-1, keepdims=True).astype(jnp.float32)
    m_new = jnp.maximum(m_old, tile_max)

    chunk = raw.astype(jnp.float32)                             # single f32 materialization
    l_new = (l_old * jnp.exp(m_old - m_new)
             + jnp.sum(jnp.exp(chunk - m_new), axis=-1, keepdims=True))

    # Target-class logit via one-hot select + lane reduce; local lane iota vs per-row shifted
    # target index (no full-tile global-column add).  NOTE: plain gather, not rescaled.
    p_new = p_old + jnp.sum(jnp.where(local_col == (tgt - j * tile_c), chunk, 0.0),
                            axis=-1, keepdims=True)

    mlp_ref[...] = jnp.concatenate([m_new, l_new, p_new], axis=1)

    @pl.when(j == last_j)
    def _finalize():
        losses = m_new + jnp.log(l_new) - p_new                 # (tile_n, 1) per-sample NLL
        if (n_rows % tile_n) != 0:                              # ragged last N tile
            row = i * tile_n + lax.broadcasted_iota(jnp.int32, (tile_n, 1), 0)
            losses = jnp.where(row < n_rows, losses, 0.0)
        # Lane-dense broadcast write of this N tile's partial sum (written once per N tile).
        out_ref[...] = jnp.zeros_like(out_ref) + jnp.sum(losses)


def _tpu_vmem_capacity_bytes(default=64 << 20):
    """Physical VMEM per core, with a conservative (v7x-sized) fallback."""
    try:
        info_fn = getattr(pltpu, "get_tpu_info", None)
        if info_fn is None:
            return default
        return int(getattr(info_fn(), "vmem_capacity_bytes", default))
    except Exception:
        return default


def cross_entropy_loss(target, prediction, *, tile_n=None, tile_c=None):
    """target: [N] int class indices, prediction: [N, C] float logits -> scalar f32 mean NLL."""
    n, c = prediction.shape
    itemsize = jnp.dtype(prediction.dtype).itemsize

    # Generation-aware VMEM budgeting:
    #   v5e / v6e: 128 MiB VMEM -> ~8 MiB logits tiles, 80 MiB scoped-VMEM limit.
    #   v7x      :  64 MiB / TC -> ~4 MiB logits tiles, 44 MiB limit, >=2 N tiles for 2 TCs.
    vmem_cap = _tpu_vmem_capacity_bytes()
    big_vmem = vmem_cap >= (100 << 20)
    budget_bytes = (8 << 20) if big_vmem else (4 << 20)
    vmem_limit = (80 << 20) if big_vmem else (44 << 20)

    # Class-axis tiling: full rows for modest C; lane-dense chunks for vocab-scale C.
    if tile_c is None:
        tile_c = c if c <= 4096 else (4096 if big_vmem else 2048)
    if tile_c != c:
        tile_c = max(128, (tile_c // 128) * 128)
        # Prefer a 128-multiple that divides C exactly (drops the ragged C tile entirely),
        # but only if it stays within 2x of the target tile width.
        for cand in range(tile_c, tile_c // 2 - 1, -128):
            if cand >= 128 and c % cand == 0:
                tile_c = cand
                break
    n_c_tiles = pl.cdiv(c, tile_c)

    # Batch-axis tiling: ~budget_bytes per logits tile (double-buffered by the pipeline).
    if tile_n is None:
        tile_n = budget_bytes // max(1, tile_c * itemsize)
        tile_n = max(8, min((tile_n // 8) * 8, 1024))
    tile_n = min(tile_n, max(8, ((n + 7) // 8) * 8))
    if (not big_vmem) and n >= 16:
        # v7x: keep >= 2 N tiles so the "parallel" axis shards across both TensorCores.
        half = max(8, (((n + 1) // 2) + 7) // 8 * 8)
        tile_n = min(tile_n, half)
    n_n_tiles = pl.cdiv(n, tile_n)

    tgt2d = target.astype(jnp.int32).reshape(n, 1)
    kernel = functools.partial(_ce_kernel, n, c, tile_n, tile_c)

    partials = pl.pallas_call(
        kernel,
        out_shape=jax.ShapeDtypeStruct((n_n_tiles, 8, 128), jnp.float32),
        grid_spec=pltpu.PrefetchScalarGridSpec(
            num_scalar_prefetch=0,
            grid=(n_n_tiles, n_c_tiles),
            in_specs=[
                pl.BlockSpec((tile_n, 1), lambda i, j: (i, 0)),        # targets (reused across j)
                pl.BlockSpec((tile_n, tile_c), lambda i, j: (i, j)),   # logits (cast in-kernel)
            ],
            out_specs=pl.BlockSpec((1, 8, 128), lambda i, j: (i, 0, 0)),
            scratch_shapes=[pltpu.VMEM((tile_n, 3), jnp.float32)],     # packed [m | l | picked]
        ),
        compiler_params=pltpu.CompilerParams(
            dimension_semantics=("parallel", "arbitrary"),
            vmem_limit_bytes=vmem_limit,
        ),
    )(tgt2d, prediction)

    # Tiny final reduce + mean (one f32 per N tile) in plain JAX.
    return jnp.sum(partials[:, 0, 0]) / jnp.float32(n)


def _reference(target, prediction):
    log_probs = jax.nn.log_softmax(prediction.astype(jnp.float32), axis=-1)
    picked = jnp.take_along_axis(log_probs, target[:, None].astype(jnp.int32), axis=-1)
    return -jnp.mean(picked)


if __name__ == "__main__":
    key = jax.random.PRNGKey(0)
    k1, k2, k3, k4 = jax.random.split(key, 4)

    # 1) MNIST-classification-like shapes: batch N=8, classes C=10 (single tile, no ragged path).
    N, C = 8, 10
    prediction = jax.random.normal(k1, (N, C), dtype=jnp.float32)
    target = jax.random.randint(k2, (N,), 0, C, dtype=jnp.int32)
    loss = cross_entropy_loss(target, prediction)
    jax.block_until_ready(loss)
    ref = _reference(target, prediction)
    assert jnp.allclose(loss, ref, atol=1e-5, rtol=1e-5), (loss, ref)

    # 2) Ragged N and ragged C tiles (exercises the last-tile lax.cond mask + row masking).
    N2, C2 = 12, 300
    pred2 = jax.random.normal(k3, (N2, C2), dtype=jnp.float32)
    tgt2 = jax.random.randint(k4, (N2,), 0, C2, dtype=jnp.int32)
    loss2 = cross_entropy_loss(tgt2, pred2, tile_c=128)
    jax.block_until_ready(loss2)
    ref2 = _reference(tgt2, pred2)
    assert jnp.allclose(loss2, ref2, atol=1e-5, rtol=1e-5), (loss2, ref2)

    # 3) bf16 logits (in-kernel upcast, input-dtype row max).
    pred3 = pred2.astype(jnp.bfloat16)
    loss3 = cross_entropy_loss(tgt2, pred3, tile_c=128)
    jax.block_until_ready(loss3)
    ref3 = _reference(tgt2, pred3)  # reference consumes the same bf16-rounded values in f32
    assert jnp.allclose(loss3, ref3, atol=5e-3, rtol=5e-3), (loss3, ref3)

    print("KERNEL_OK")
</pallas_src>

<mosaic_0001>
module attributes {stable_mosaic.version = 11 : i64} {
  func.func @_ce_kernel(%arg0: i32, %arg1: i32, %arg2: memref<8x1xi32, #tpu.memory_space<vmem>>, %arg3: memref<8x10xf32, #tpu.memory_space<vmem>>, %arg4: memref<1x8x128xf32, #tpu.memory_space<vmem>>, %arg5: memref<8x3xf32, #tpu.memory_space<vmem>>) attributes {dimension_semantics = [#tpu.dimension_semantics<parallel>, #tpu.dimension_semantics<arbitrary>], iteration_bounds = array<i64: 1, 1>, scalar_prefetch = 0 : i64, scratch_operands = 1 : i64, tpu.core_type = #tpu.core_type<tc>, window_params = [{transform_indices = @transform_0, window_bounds = array<i64: 8, 1>}, {transform_indices = @transform_1, window_bounds = array<i64: 8, 10>}, {transform_indices = @transform_2, window_bounds = array<i64: 1, 8, 128>}]} {
    %c0_i32 = arith.constant 0 : i32
    %0 = arith.cmpi eq, %arg1, %c0_i32 : i32
    %1 = arith.extui %0 : i1 to i32
    %c0_i32_0 = arith.constant 0 : i32
    %2 = arith.cmpi ne, %1, %c0_i32_0 : i32
    scf.if %2 {
      %37 = tpu.iota {dimensions = array<i32: 1>} : vector<8x3xi32>
      %c0_i32_13 = arith.constant 0 : i32
      %38 = vector.broadcast %c0_i32_13 : i32 to vector<8x3xi32>
      %39 = arith.cmpi eq, %37, %38 : vector<8x3xi32>
      %cst_14 = arith.constant 0xFF800000 : f32
      %cst_15 = arith.constant 0.000000e+00 : f32
      %40 = vector.broadcast %cst_14 : f32 to vector<8x3xf32>
      %41 = vector.broadcast %cst_15 : f32 to vector<8x3xf32>
      %42 = arith.select %39, %40, %41 : vector<8x3xi1>, vector<8x3xf32>
      %c0_16 = arith.constant 0 : index
      %c0_17 = arith.constant 0 : index
      %43 = vector.load %arg5[%c0_16, %c0_17] : memref<8x3xf32, #tpu.memory_space<vmem>>, vector<8x3xf32>
      tpu.vector_store %arg5[%c0_16, %c0_17], %42 {strides = array<i32>} : memref<8x3xf32, #tpu.memory_space<vmem>>, vector<8x3xf32>,
    } else {
    }
    %c0 = arith.constant 0 : index
    %c0_1 = arith.constant 0 : index
    %3 = vector.load %arg3[%c0, %c0_1] : memref<8x10xf32, #tpu.memory_space<vmem>>, vector<8x10xf32>
    %c0_2 = arith.constant 0 : index
    %c0_3 = arith.constant 0 : index
    %4 = vector.load %arg2[%c0_2, %c0_3] : memref<8x1xi32, #tpu.memory_space<vmem>>, vector<8x1xi32>
    %5 = tpu.iota {dimensions = array<i32: 1>} : vector<8x10xi32>
    %c0_4 = arith.constant 0 : index
    %c0_5 = arith.constant 0 : index
    %6 = vector.load %arg5[%c0_4, %c0_5] : memref<8x3xf32, #tpu.memory_space<vmem>>, vector<8x3xf32>
    %7 = vector.extract_strided_slice %6 {offsets = [0, 0], sizes = [8, 1], strides = [1, 1]} : vector<8x3xf32> to vector<8x1xf32>
    %8 = vector.extract_strided_slice %6 {offsets = [0, 1], sizes = [8, 1], strides = [1, 1]} : vector<8x3xf32> to vector<8x1xf32>
    %9 = vector.extract_strided_slice %6 {offsets = [0, 2], sizes = [8, 1], strides = [1, 1]} : vector<8x3xf32> to vector<8x1xf32>
    %cst = arith.constant dense<0xFF800000> : vector<8xf32>
    %10 = vector.multi_reduction <maximumf>, %3, %cst [1] : vector<8x10xf32> to vector<8xf32>
    %11 = vector.shape_cast %10 : vector<8xf32> to vector<8x1xf32>
    %12 = arith.maximumf %7, %11 : vector<8x1xf32>
    %13 = arith.subf %7, %12 : vector<8x1xf32>
    %14 = math.exp %13 : vector<8x1xf32>
    %15 = arith.mulf %8, %14 : vector<8x1xf32>
    %16 = vector.broadcast %12 : vector<8x1xf32> to vector<8x10xf32>
    %17 = arith.subf %3, %16 : vector<8x10xf32>
    %18 = math.exp %17 : vector<8x10xf32>
    %cst_6 = arith.constant dense<0.000000e+00> : vector<8xf32>
    %19 = vector.multi_reduction <add>, %18, %cst_6 [1] : vector<8x10xf32> to vector<8xf32>
    %20 = vector.shape_cast %19 : vector<8xf32> to vector<8x1xf32>
    %21 = arith.addf %15, %20 : vector<8x1xf32>
    %c10_i32 = arith.constant 10 : i32
    %22 = arith.muli %arg1, %c10_i32 : i32
    %23 = vector.broadcast %22 : i32 to vector<8x1xi32>
    %24 = arith.subi %4, %23 : vector<8x1xi32>
    %25 = vector.broadcast %24 : vector<8x1xi32> to vector<8x10xi32>
    %26 = arith.cmpi eq, %5, %25 : vector<8x10xi32>
    %cst_7 = arith.constant 0.000000e+00 : f32
    %27 = vector.broadcast %cst_7 : f32 to vector<8x10xf32>
    %28 = arith.select %26, %3, %27 : vector<8x10xi1>, vector<8x10xf32>
    %cst_8 = arith.constant dense<0.000000e+00> : vector<8xf32>
    %29 = vector.multi_reduction <add>, %28, %cst_8 [1] : vector<8x10xf32> to vector<8xf32>
    %30 = vector.shape_cast %29 : vector<8xf32> to vector<8x1xf32>
    %31 = arith.addf %9, %30 : vector<8x1xf32>
    %32 = tpu.concatenate %12, %21, %31 in 1 : vector<8x1xf32>, vector<8x1xf32>, vector<8x1xf32> -> vector<8x3xf32>
    %c0_9 = arith.constant 0 : index
    %c0_10 = arith.constant 0 : index
    %33 = vector.load %arg5[%c0_9, %c0_10] : memref<8x3xf32, #tpu.memory_space<vmem>>, vector<8x3xf32>
    tpu.vector_store %arg5[%c0_9, %c0_10], %32 {strides = array<i32>} : memref<8x3xf32, #tpu.memory_space<vmem>>, vector<8x3xf32>,
    %c0_i32_11 = arith.constant 0 : i32
    %34 = arith.cmpi eq, %arg1, %c0_i32_11 : i32
    %35 = arith.extui %34 : i1 to i32
    %c0_i32_12 = arith.constant 0 : i32
    %36 = arith.cmpi ne, %35, %c0_i32_12 : i32
    scf.if %36 {
      %37 = math.log %21 : vector<8x1xf32>
      %38 = arith.addf %12, %37 : vector<8x1xf32>
      %39 = arith.subf %38, %31 : vector<8x1xf32>
      %cst_13 = arith.constant 0.000000e+00 : f32
      %40 = vector.broadcast %cst_13 : f32 to vector<1x8x128xf32>
      %41 = vector.shape_cast %39 : vector<8x1xf32> to vector<1x8x1xf32>
      %cst_14 = arith.constant dense<0.000000e+00> : vector<1xf32>
      %42 = vector.multi_reduction <add>, %41, %cst_14 [1, 2] : vector<1x8x1xf32> to vector<1xf32>
      %43 = vector.shape_cast %42 : vector<1xf32> to vector<1x1x1xf32>
      %44 = vector.extract %43[0, 0, 0] : f32 from vector<1x1x1xf32>
      %45 = vector.broadcast %44 : f32 to vector<1x8x128xf32>
      %46 = arith.addf %40, %45 : vector<1x8x128xf32>
      %c0_15 = arith.constant 0 : index
      %c0_16 = arith.constant 0 : index
      %c0_17 = arith.constant 0 : index
      %47 = vector.load %arg4[%c0_15, %c0_16, %c0_17] : memref<1x8x128xf32, #tpu.memory_space<vmem>>, vector<1x8x128xf32>
      tpu.vector_store %arg4[%c0_15, %c0_16, %c0_17], %46 {strides = array<i32>} : memref<1x8x128xf32, #tpu.memory_space<vmem>>, vector<1x8x128xf32>,
    } else {
    }
    return
  }
  func.func @transform_0(%arg0: i32, %arg1: i32) -> (i32, i32) {
    %c0_i32 = arith.constant 0 : i32
    %c0_i32_0 = arith.constant 0 : i32
    return %arg0, %c0_i32 : i32, i32
  }
  func.func @transform_1(%arg0: i32, %arg1: i32) -> (i32, i32) {
    %c0_i32 = arith.constant 0 : i32
    return %arg0, %arg1 : i32, i32
  }
  func.func @transform_2(%arg0: i32, %arg1: i32) -> (i32, i32, i32) {
    %c0_i32 = arith.constant 0 : i32
    %c0_i32_0 = arith.constant 0 : i32
    %c0_i32_1 = arith.constant 0 : i32
    return %arg0, %c0_i32, %c0_i32_0 : i32, i32, i32
  }
}

</mosaic_0001>

<bundles_post_ra>
// kernel: tpu_custom_call.1
= control target key start
LH: loop header
LB: loop body
LE: loop exit
PB: predicated region body
PF: predicated region fallthrough
CT: control target
= control target key end

     0   :  { %vm27_vm0 = vcmask 80896   ;;  %v16_v1 = vlaneseq  ;;  %s187_s0 = inlined_call_operand.vmem [shape: s32[8,1], index: 0, kind: input, shape index: {}]   ;;  %s188_s1 = inlined_call_operand.vmem [shape: f32[8,10], index: 1, kind: input, shape index: {}]   ;;  %s189_s2 = inlined_call_operand.hbm [shape: f32[1,8,128], index: 2, kind: output, shape index: {}]  }
   0x1   :  { %v22_v0 = vld [vmem:[%s188_s1] sm:$0xff] }
   0x2   :  { %7 = vsyncpa [#allocation4], 0  ;;  %v28_v2 = vsel %vm27_vm0, %v22_v0, -inf  ;;  %v17_v3 = vand.u32 127, %v16_v1  ;;  %vm20_vm1 = vcmask 23552   ;;  %v150_v4 = vmov 0.0  }
   0x3   :  { %29 = vmax.xlane.f32.xlu0 %v28_v2  ;;  %v151_v6 = vmov 0   ;;  %v23_v7 = vld [vmem:[%s187_s0] sm:$0xff]  ;;  %s152_s0 = smov 1   ;;  %vm64_vm4 = vcmask 7168   ;;  %vm66_vm5 = vcmask 15360   ;;  %s153_s1 = smov 127  }
   0x4   :  { %vm18_vm2 = vcmp.eq.s32.totalorder %v17_v3, 0  ;;  %120 = vset.pattern.permute.xlu0 %v151_v6  ;;  %121 = vset.pattern.permute.xlu1 %v151_v6  ;;  %s154_s13 = smov 126   ;;  %s155_s14 = smov [#allocation3]  }
   0x5   :  { %v19_v5 = vsel %vm18_vm2, -inf, %v150_v4  ;;  %56 = vperm.xlu1 %121, %v23_v7   ;;  %s104_s15 = sshll.u32 %s155_s14, 4  ;;  %s105_s15 = int_to_ptr.vmem [resolvable:$true] %s104_s15 }
   0x6   :  { %21 = vst.msk [vmem:[#allocation2] sm:$0xff] %vm20_vm1, %v19_v5  ;;  %s128_s17 = scalar_lea.vmem %s105_s15, 128  ;;  %p133_p1 = scmp.lt.s32.totalorder %s105_s15, %s105_s15 }
   0x7   :  { %p129_p0 = scmp.ne.s32.totalorder %s105_s15, %s128_s17  ;;  %p134_p2 = scmp.lt.s32.totalorder %s128_s17, %s128_s17 }
   0x9   :  { %p135_p3 = por %p134_p2, %p133_p1 }
   0xb   :  { %p136_p4 = pnand %p135_p3, %p129_p0 }
   0xd   :  { %v26_v8 = vld [vmem:[#allocation2] sm:$0xff] }
  0x80   :  { %v57_v11 = vpop.permute.xlu1 %56 }
  0x81   :  { %vm58_vm3 = vcmp.eq.s32.totalorder %v17_v3, %v57_v11 }
  0x82   :  { %v59_v12 = vsel %vm58_vm3, %v22_v0, 0.0 }
  0x83   :  { %v60_v13 = vsel %vm27_vm0, %v59_v12, 0.0 }
  0x8c   :  { %v30_v9 = vpop.xlane.xlu0 %29 }
  0x8d   :  { %v31_v10 = vmax.f32 %v26_v8, %v30_v9 }
  0x8f   :  { %42 = vperm.xlu0 %120, %v31_v10   ;;  %v32_v17 = vsub.f32 %v26_v8, %v31_v10 }
  0x91   :  { %v33_v19 = vmul.f32 1.442695, %v32_v17 }
  0xae   :  { %61 = vadd.xlane.f32.xlu0 %v60_v13 }
 0x10a   :  { %v43_v14 = vpop.permute.xlu0 %42 }
 0x10b   :  { %v45_v15 = vsub.f32 %v22_v0, %v43_v14 }
 0x10d   :  { %v46_v16 = vmul.f32 1.442695, %v45_v15 }
 0x10f   :  { %122 = vpow2.f32 %v46_v16 }
 0x110   :  { %124 = vpow2.f32 %v33_v19 }
 0x11c   :  { %v123_v18 = vpop.eup %122 }
 0x11d   :  { %v48_v20 = vsel %vm27_vm0, %v123_v18, 0.0  ;;  %v125_v21 = vpop.eup %124 }
 0x11e   :  { %49 = vadd.xlane.f32.xlu1 %v48_v20 }
 0x12f   :  { %36 = vrot.lane.b32.xlu1 %v125_v21, %s152_s0 }
 0x137   :  { %v62_v23 = vpop.xlane.xlu0 %61 }
 0x138   :  { %v63_v26 = vadd.f32 %v62_v23, %v26_v8 }
 0x1a7   :  { %v50_v22 = vpop.xlane.xlu1 %49 }
 0x1ab   :  { %v37_v24 = vpop.permute.xlu1 %36 }
 0x1ac   :  { %v39_v25 = vmul.f32 %v37_v24, %v26_v8 }
 0x1ae   :  { %v51_v27 = vadd.f32 %v50_v22, %v39_v25 }
 0x1b0   :  { %126 = vlog2.f32 %v51_v27  ;;  %v65_v28 = vsel %vm64_vm4, %v31_v10, %v51_v27 }
 0x1b1   :  { %v67_v29 = vsel %vm66_vm5, %v65_v28, %v63_v26 }
 0x1b2   :  { %69 = vst.msk [vmem:[#allocation2] sm:$0xff] %vm20_vm1, %v67_v29 }
 0x1bd   :  { %v127_v30 = vpop.eup %126 }
 0x1be   :  { %v74_v31 = vmul.f32 0.6931472, %v127_v30 }
 0x1c0   :  { %76 = vrot.lane.b32.xlu1 %v74_v31, %s153_s1 }
 0x1c4   :  { %81 = vrot.lane.b32.xlu1 %v63_v26, %s154_s13 }
 0x232   :  { %v77_v32 = vpop.permute.xlu1 %76 }
 0x233   :  { %v79_v33 = vadd.f32 %v77_v32, %v31_v10 }
 0x236   :  { %v82_v34 = vpop.permute.xlu1 %81 }
 0x237   :  { %v84_v35 = vsub.f32 %v79_v33, %v82_v34 }
 0x239   :  { %v85_v36 = vsel %vm64_vm4, %v84_v35, 0.0 }
 0x23a   :  { %86 = vadd.xlane.f32.xlu1 %v85_v36 }
 0x2c3   :  { %v87_v37 = vpop.xlane.xlu1 %86 }
 0x2c4   :  { %v88_v38 = vrot.slane %v87_v37, 4 }
 0x2c6   :  { %v89_v39 = vadd.f32 %v88_v38, %v87_v37 }
 0x2c8   :  { %v90_v40 = vrot.slane %v89_v39, 2 }
 0x2ca   :  { %v91_v41 = vadd.f32 %v90_v40, %v89_v39 }
 0x2cc   :  { %v92_v42 = vrot.slane %v91_v41, 1 }
 0x2ce   :  { %v93_v43 = vadd.f32 %v92_v42, %v91_v41 }
 0x2d0   :  { %112 = vpush %v93_v43 }
 0x301   :  { %s113_s16 = spop %112 }
 0x302   :  { %v95_v44 = vstv %s113_s16 }
 0x303   :  { %97 = vst [vmem:[#allocation3] sm:$0xff] %v95_v44 }
 0x304   :  { %139 = shalt.err (!%p136_p4)
}
 0x305   :  { %107 = dma.vmem_to_hbm [thread:$0]  %s105_s15, 128, %s189_s2, [#allocation4]  }
 0x306   :  { %148 = dma.done.wait [#allocation4], 128  }
 0x307   :  { %149 = vsyncadd [#allocation4], 4294967168 }
 0x308   :  { %111 = vsyncpa [#allocation4], 1 }

</bundles_post_ra>
